<compile_context>
chip_gen: v7x
topology: tpu7x:2x2x1
jax: 0.10.0
libtpu: 0.0.40
codegen_flags: <defaults>
</compile_context>

<pallas_src>
import numpy as np

import jax
import jax.numpy as jnp
from jax.experimental import pallas as pl
from jax.experimental.pallas import tpu as pltpu

_LANE = 128            # vreg lane width
_SUBLANE_F32 = 8       # f32 sublane packing
_SUBLANE_BF16 = 16     # bf16 sublane packing


def _round_up(x, m):
    return (x + m - 1) // m * m


def _cdiv(a, b):
    return -(-a // b)


def _matmul_bias_relu_kernel(x_ref, w_ref, b_ref, o_ref):
    """One grid step: (TM, D) @ (D, Cg) + bias, ReLU.

    x_ref: (TM, D)   packed im2col rows (D = g*Kc, full-dim block)
    w_ref: (D, Cg)   block-diagonal conv weight (Cg = g*Cout, lane-dense)
    b_ref: (1, Cg)   bias tiled g times (f32)
    o_ref: (TM, Cg)  lane-dense output slab
    """
    acc = jnp.dot(x_ref[...], w_ref[...], preferred_element_type=jnp.float32)
    acc = acc + b_ref[...]                       # (1, Cg) broadcasts over rows
    o_ref[...] = jnp.maximum(acc, 0.0).astype(o_ref.dtype)


def cnn3d_cell_forward(x_nchw, weight_oihw, bias, kernel_size,
                       *, compute_dtype=jnp.float32, max_rows_per_step=2048):
    """Forward pass of CNN3D_cell: Conv2d('same' padding) + ReLU.

    x_nchw:      (N, Cin, H, W)    float32
    weight_oihw: (Cout, Cin, K, K) float32  (PyTorch Conv2d layout)
    bias:        (Cout,)           float32
    returns:     (N, Cout, H, W)   x_nchw.dtype
    """
    N, Cin, H, W = x_nchw.shape
    Cout = weight_oihw.shape[0]
    K = kernel_size
    # p = K // 2 only matches PyTorch 'same' semantics for odd kernels.
    assert K % 2 == 1, "kernel_size must be odd for 'same' padding via K//2"
    p = K // 2
    out_dtype = x_nchw.dtype

    # ---------------- im2col glue (plain JAX, runs once) ----------------
    x_nhwc = jnp.transpose(x_nchw, (0, 2, 3, 1))                  # (N,H,W,Cin)
    x_padded = jnp.pad(x_nhwc, ((0, 0), (p, p), (p, p), (0, 0)))  # (N,Hp,Wp,Cin)

    # One row per output pixel, features ordered (kh, kw, cin) to match the
    # OIHW -> HWIO weight reshape below.
    cols = [x_padded[:, kh:kh + H, kw:kw + W, :]
            for kh in range(K) for kw in range(K)]
    Kc = K * K * Cin
    M = N * H * W
    x_cols = jnp.concatenate(cols, axis=-1).reshape(M, Kc)        # (M, Kc)

    w_mat = jnp.transpose(weight_oihw, (2, 3, 1, 0)).reshape(Kc, Cout)

    # ------------- lane-pack output channels (no zero padding) -------------
    # Pack g = 128/Cout pixels per output row so output stores are unmasked
    # full-lane vst with zero wasted writeback bytes.  Pure reshapes on the
    # data side; weight becomes block-diagonal (exact).
    if Cout < _LANE and _LANE % Cout == 0:
        g = _LANE // Cout
    else:
        g = 1
    D = g * Kc
    Cg = g * Cout

    if g > 1:
        w_big = jnp.kron(jnp.eye(g, dtype=w_mat.dtype), w_mat)    # (D, Cg) block-diag
        b_big = jnp.tile(bias, g)
    else:
        w_big = w_mat
        b_big = bias
    w_big = w_big.astype(compute_dtype)
    b_big = b_big.reshape(1, Cg).astype(jnp.float32)

    # ---------------- row tiling ----------------
    sub = _SUBLANE_BF16 if compute_dtype == jnp.bfloat16 else _SUBLANE_F32
    R = _cdiv(M, g)                         # packed rows needed to cover M
    R8 = _round_up(R, sub)

    # VMEM accounting: double-buffered x block + double-buffered out block +
    # f32 accumulator temp, plus (double-buffered) resident weight and bias.
    dt = np.dtype(compute_dtype).itemsize
    ot = np.dtype(out_dtype).itemsize
    per_row = 2 * D * dt + 2 * Cg * ot + Cg * 4
    fixed = 2 * (D * Cg * dt + Cg * 4)
    try:
        info = pltpu.get_tpu_info()
        vmem_cap = getattr(info, "vmem_capacity_bytes", 64 * 1024 * 1024)
    except Exception:
        vmem_cap = 64 * 1024 * 1024         # conservative (v7x physical VMEM)
    budget = min(vmem_cap // 4, 16 * 1024 * 1024)
    avail = max(budget - fixed, 0)
    cap_rows = max(sub, (avail // per_row) // sub * sub)
    max_tm = max(sub, min(max_rows_per_step, cap_rows) // sub * sub)

    # At least 2 balanced row blocks when splittable (v7x has 2 TensorCores;
    # the extra ~0.35us step is noise on v5e/v6e).  Balancing TM to
    # ~ceil(R/nb) also avoids a nearly-empty padded tail block.
    nb = max(2, _cdiv(R8, max_tm))
    TM = min(max_tm, _round_up(_cdiv(R8, nb), sub))
    num_blocks = _cdiv(R8, TM)
    R_pad = num_blocks * TM

    total_rows = R_pad * g
    x_packed = jnp.pad(x_cols, ((0, total_rows - M), (0, 0)))     # exact: zeros
    x_packed = x_packed.reshape(R_pad, D).astype(compute_dtype)   # pure reshape

    out_p = pl.pallas_call(
        _matmul_bias_relu_kernel,
        out_shape=jax.ShapeDtypeStruct((R_pad, Cg), out_dtype),
        grid_spec=pltpu.PrefetchScalarGridSpec(
            num_scalar_prefetch=0,
            grid=(num_blocks,),
            in_specs=[
                pl.BlockSpec((TM, D), lambda i: (i, 0)),     # full-dim last axis
                pl.BlockSpec((D, Cg), lambda i: (0, 0)),     # resident weight
                pl.BlockSpec((1, Cg), lambda i: (0, 0)),     # resident bias
            ],
            out_specs=pl.BlockSpec((TM, Cg), lambda i: (i, 0)),
        ),
        compiler_params=pltpu.CompilerParams(
            dimension_semantics=("parallel",),
            vmem_limit_bytes=32 * 1024 * 1024,
        ),
    )(x_packed, w_big, b_big)

    # Un-pack: (R_pad, g*Cout) -> (R_pad*g, Cout), drop padded pixel rows.
    out_pix = out_p.reshape(R_pad * g, Cout)[:M]                  # (M, Cout)
    out = out_pix.reshape(N, H, W, Cout)
    return jnp.transpose(out, (0, 3, 1, 2))                       # (N,Cout,H,W)


def orthogonal_conv_weight(key, n_hidden, n_input, kernel_size):
    """Orthogonal init matching nn.init.orthogonal_ semantics:
    flatten to (Cout, Cin*K*K) and make rows orthonormal."""
    rows = n_hidden
    cols = n_input * kernel_size * kernel_size
    a = jax.random.normal(key, (max(rows, cols), min(rows, cols)),
                          dtype=jnp.float32)
    q, r = jnp.linalg.qr(a)
    d = jnp.sign(jnp.diagonal(r))
    q = q * d[None, :]
    if rows < cols:
        q = q.T
    w = q[:rows, :cols]
    return w.reshape(n_hidden, n_input, kernel_size, kernel_size)


if __name__ == "__main__":
    # Small shapes consistent with the module's forward (Conv2d over NCHW).
    N, n_input, H, W = 2, 4, 16, 16
    n_hidden = 32
    kernel_size = 3

    key = jax.random.PRNGKey(0)
    k_x, k_w = jax.random.split(key)

    x = jax.random.normal(k_x, (N, n_input, H, W), dtype=jnp.float32)
    weight = orthogonal_conv_weight(k_w, n_hidden, n_input, kernel_size)
    bias = jnp.zeros((n_hidden,), dtype=jnp.float32)  # nn.init.constant_(bias, 0.0)

    out = cnn3d_cell_forward(x, weight, bias, kernel_size)
    out = jax.block_until_ready(out)

    # Cross-check against XLA's native conv (same semantics as torch Conv2d).
    ref = jax.lax.conv_general_dilated(
        x, weight, window_strides=(1, 1),
        padding=[(kernel_size // 2, kernel_size // 2)] * 2,
        dimension_numbers=("NCHW", "OIHW", "NCHW"))
    ref = jnp.maximum(ref + bias[None, :, None, None], 0.0)
    assert out.shape == (N, n_hidden, H, W)
    assert jnp.allclose(out, ref, rtol=1e-4, atol=1e-4), "mismatch vs reference conv"

    print("KERNEL_OK")
</pallas_src>

<mosaic_0001>
module attributes {stable_mosaic.version = 11 : i64} {
  func.func @_matmul_bias_relu_kernel(%arg0: i32, %arg1: memref<64x144xf32, #tpu.memory_space<vmem>>, %arg2: memref<144x128xf32, #tpu.memory_space<vmem>>, %arg3: memref<1x128xf32, #tpu.memory_space<vmem>>, %arg4: memref<64x128xf32, #tpu.memory_space<vmem>>) attributes {dimension_semantics = [#tpu.dimension_semantics<parallel>], iteration_bounds = array<i64: 2>, scalar_prefetch = 0 : i64, scratch_operands = 0 : i64, tpu.core_type = #tpu.core_type<tc>, window_params = [{transform_indices = @transform_0, window_bounds = array<i64: 64, 144>}, {pipeline_mode = #tpu.pipeline_mode<synchronous>, transform_indices = @transform_1, window_bounds = array<i64: 144, 128>}, {pipeline_mode = #tpu.pipeline_mode<synchronous>, transform_indices = @transform_2, window_bounds = array<i64: 1, 128>}, {transform_indices = @transform_3, window_bounds = array<i64: 64, 128>}]} {
    %c0 = arith.constant 0 : index
    %c0_0 = arith.constant 0 : index
    %0 = vector.load %arg1[%c0, %c0_0] : memref<64x144xf32, #tpu.memory_space<vmem>>, vector<64x144xf32>
    %c0_1 = arith.constant 0 : index
    %c0_2 = arith.constant 0 : index
    %1 = vector.load %arg2[%c0_1, %c0_2] : memref<144x128xf32, #tpu.memory_space<vmem>>, vector<144x128xf32>
    %cst = arith.constant dense<0.000000e+00> : vector<64x128xf32>
    %2 = tpu.matmul %0, %1, %cst {dimension_numbers = #tpu.dot_dimension_numbers<[1], [0], [0], [1], [0, 0, 1, 1], [], []>} : vector<64x144xf32>, vector<144x128xf32>, vector<64x128xf32> -> vector<64x128xf32>
    %c0_3 = arith.constant 0 : index
    %c0_4 = arith.constant 0 : index
    %3 = vector.load %arg3[%c0_3, %c0_4] : memref<1x128xf32, #tpu.memory_space<vmem>>, vector<1x128xf32>
    %4 = vector.broadcast %3 : vector<1x128xf32> to vector<64x128xf32>
    %5 = arith.addf %2, %4 : vector<64x128xf32>
    %cst_5 = arith.constant 0.000000e+00 : f32
    %6 = vector.broadcast %cst_5 : f32 to vector<64x128xf32>
    %7 = arith.maximumf %5, %6 : vector<64x128xf32>
    %c0_6 = arith.constant 0 : index
    %c0_7 = arith.constant 0 : index
    %8 = vector.load %arg4[%c0_6, %c0_7] : memref<64x128xf32, #tpu.memory_space<vmem>>, vector<64x128xf32>
    tpu.vector_store %arg4[%c0_6, %c0_7], %7 {strides = array<i32>} : memref<64x128xf32, #tpu.memory_space<vmem>>, vector<64x128xf32>,
    return
  }
  func.func @transform_0(%arg0: i32) -> (i32, i32) {
    %c0_i32 = arith.constant 0 : i32
    %c0_i32_0 = arith.constant 0 : i32
    return %arg0, %c0_i32 : i32, i32
  }
  func.func @transform_1(%arg0: i32) -> (i32, i32) {
    %c0_i32 = arith.constant 0 : i32
    %c0_i32_0 = arith.constant 0 : i32
    %c0_i32_1 = arith.constant 0 : i32
    return %c0_i32, %c0_i32_0 : i32, i32
  }
  func.func @transform_2(%arg0: i32) -> (i32, i32) {
    %c0_i32 = arith.constant 0 : i32
    %c0_i32_0 = arith.constant 0 : i32
    %c0_i32_1 = arith.constant 0 : i32
    return %c0_i32, %c0_i32_0 : i32, i32
  }
  func.func @transform_3(%arg0: i32) -> (i32, i32) {
    %c0_i32 = arith.constant 0 : i32
    %c0_i32_0 = arith.constant 0 : i32
    return %arg0, %c0_i32 : i32, i32
  }
}

</mosaic_0001>

<bundles_post_ra>
// kernel: tpu_custom_call.1
= control target key start
LH: loop header
LB: loop body
LE: loop exit
PB: predicated region body
PF: predicated region fallthrough
CT: control target
= control target key end

     0   :  { %8 = vsyncpa [#allocation3], 0  ;;  %s855_s0 = inlined_call_operand.vmem [shape: f32[128,144], index: 0, kind: input, shape index: {}]   ;;  %s856_s1 = inlined_call_operand.vmem [shape: f32[144,128], index: 1, kind: input, shape index: {}]   ;;  %s857_s2 = inlined_call_operand.vmem [shape: f32[1,128], index: 2, kind: input, shape index: {}]   ;;  %s858_s3 = inlined_call_operand.hbm [shape: f32[128,128], index: 3, kind: output, shape index: {}]  }
   0x1   :  { %10 = vsyncpa [#allocation3 + $0x1], 0  ;;  %s637_s12 = smov 0   ;;  %s639_s13 = smov 0  }
   0x2   :  { %s641_s14 = smov 0   ;;  %s643_s15 = smov 0  }
   0x3 LB: > { %s658_s16 = sadd.s32 4294967295, %s611_s15   ;;  %s438_s17 = sadd.s32 4294967294, %s611_s15   ;;  %s611_s15 = sphi %s643_s15, %s864_s15   ;;  %s607_s14 = sphi %s641_s14, %s863_s14   ;;  %s603_s13 = sphi %s639_s13, %s862_s13   ;;  %s599_s12 = sphi %s637_s12, %s861_s12  }
   0x4   : > { %s662_s18 = sadd.s32 1, %s611_s15   ;;  %s91_s19 = sadd.s32 1, %s607_s14 }
   0x5   : > { %s88_s20 = ssub.s32 %s611_s15, %s662_s18  ;;  %p101_p0 = scmp.ne.s32.totalorder %s607_s14, %s603_s13 }
   0x6   : > { %p89_p1 = scmp.eq.s32.totalorder %s88_s20, 0  ;;  %p102_p2 = scmp.eq.s32.totalorder %s658_s16, 1 }
   0x7   : > { %p107_p3 = scmp.ne.s32.totalorder %s603_s13, %s599_s12  ;;  %p108_p4 = scmp.eq.s32.totalorder %s438_s17, 1 }
   0x8   : > { %s673_s21 = scalar_select %p89_p1, %s607_s14, %s91_s19  }
   0x9   : > { %p675_p5 = por %p102_p2, %p101_p0  ;;  %p679_p6 = por %p108_p4, %p107_p3 }
   0xa   : > { %p441_p7 = scmp.ge.s32.totalorder %s611_s15, 1  ;;  %p142_p8 = scmp.lt.s32.totalorder %s611_s15, 3 }
   0xc   : > { %p143_p9 = pnand %p441_p7, %p142_p8 }
   0xd   : > { %v191_v0 = vld [vmem:[%s856_s1] sm:$0xff] (!%p143_p9)  ;;  %v192_v1 = vld [vmem:[%s856_s1 + $0x8] sm:$0xff] (!%p143_p9)  ;;  %v193_v2 = vld [vmem:[%s856_s1 + $0x10] sm:$0xff] (!%p143_p9)  ;;  %s443_s30 = sshll.u32 (!%p143_p9), %s658_s16, 3  ;;  %v613_v3 = vmov (!%p143_p9), 0.0|0.0   ;;  %vm216_vm0 = vcmask (!%p143_p9), 130048  }
   0xe   : > { %146 = sbr.rel (%p143_p9) target bundleno = 294 (0x126), region = 32  ;;  %462 = vmatprep.subr.bf16.mxu0 (!%p143_p9), %v613_v3  ;;  %489 = vmatprep.subr.bf16.mxu1 (!%p143_p9), %v613_v3  ;;  %v463_v4 = vpack.c.bf16 (!%p143_p9), %v192_v1, %v191_v0  ;;  %v194_v5 = vld [vmem:[%s856_s1 + $0x18] sm:$0xff] (!%p143_p9)  ;;  %p168_p10 = scmp.lt.s32.totalorder (!%p143_p9), %s443_s30, 15  ;;  %v195_v7 = vld [vmem:[%s856_s1 + $0x20] sm:$0xff] (!%p143_p9)  ;;  %v196_v8 = vld [vmem:[%s856_s1 + $0x28] sm:$0xff] (!%p143_p9) }
   0xf   : > { %v466_v6 = vpack.c.bf16 (!%p143_p9), %v194_v5, %v193_v2  ;;  %v469_v9 = vpack.c.bf16 (!%p143_p9), %v196_v8, %v195_v7  ;;  %v197_v12 = vld [vmem:[%s856_s1 + $0x30] sm:$0xff] (!%p143_p9)  ;;  %v198_v13 = vld [vmem:[%s856_s1 + $0x38] sm:$0xff] (!%p143_p9)  ;;  %v199_v15 = vld [vmem:[%s856_s1 + $0x40] sm:$0xff] (!%p143_p9)  ;;  %s461_s7 = sshll.u32 (!%p143_p9), %s658_s16, 10  ;;  %s614_s20 = smov (!%p143_p9), [#allocation2]  }
  0x10   : > { %464 = vmatpush1.bf16.msra.mxu0 (!%p143_p9), %v463_v4  ;;  %498 = vmatpush1.bf16.msra.mxu1 (!%p143_p9), %v463_v4  ;;  %v472_v14 = vpack.c.bf16 (!%p143_p9), %v198_v13, %v197_v12  ;;  %v200_v16 = vld [vmem:[%s856_s1 + $0x48] sm:$0xff] (!%p143_p9)  ;;  %v201_v18 = vld [vmem:[%s856_s1 + $0x50] sm:$0xff] (!%p143_p9)  ;;  %v202_v19 = vld [vmem:[%s856_s1 + $0x58] sm:$0xff] (!%p143_p9)  ;;  %s806_s11 = scalar_lea.hbm (!%p143_p9), %s858_s3, %s461_s7  ;;  %s553_s24 = sshll.u32 (!%p143_p9), %s614_s20, 4  ;;  %s554_s24 = int_to_ptr.vmem [resolvable:$false] %s553_s24 }
  0x11   : > { %465 = vmatprep.subr.bf16.mxu0 (!%p143_p9), %v613_v3  ;;  %490 = vmatprep.subr.bf16.mxu1 (!%p143_p9), %v613_v3  ;;  %v475_v17 = vpack.c.bf16 (!%p143_p9), %v200_v16, %v199_v15  ;;  %v478_v20 = vpack.c.bf16 (!%p143_p9), %v202_v19, %v201_v18  ;;  %v203_v21 = vld [vmem:[%s856_s1 + $0x60] sm:$0xff] (!%p143_p9)  ;;  %v204_v22 = vld [vmem:[%s856_s1 + $0x68] sm:$0xff] (!%p143_p9)  ;;  %v205_v24 = vld [vmem:[%s856_s1 + $0x70] sm:$0xff] (!%p143_p9)  ;;  %s555_s25 = scalar_lea.vmem (!%p143_p9), %s554_s24, 2048 }
  0x12   : > { %v481_v23 = vpack.c.bf16 (!%p143_p9), %v204_v22, %v203_v21  ;;  %v206_v25 = vld [vmem:[%s856_s1 + $0x78] sm:$0xff] (!%p143_p9)  ;;  %v207_v27 = vld [vmem:[%s856_s1 + $0x80] sm:$0xff] (!%p143_p9)  ;;  %v208_v28 = vld [vmem:[%s856_s1 + $0x88] sm:$0xff] (!%p143_p9) }
  0x13   : > { %v484_v26 = vpack.c.bf16 (!%p143_p9), %v206_v25, %v205_v24  ;;  %v487_v29 = vpack.c.bf16 (!%p143_p9), %v208_v28, %v207_v27  ;;  %v446_v44 = vld [vmem:[%s857_s2] ss:$0 sm:$0xff] (!%p143_p9) }
  0x14   : > { %467 = vmatpush1.bf16.msra.mxu0 (!%p143_p9), %v466_v6  ;;  %499 = vmatpush1.bf16.msra.mxu1 (!%p143_p9), %v466_v6 }
  0x15   : > { %s866_s30 = smov (!%p168_p10, %s443_s30), 15  ;;  %468 = vmatprep.subr.bf16.mxu0 %v613_v3  ;;  %491 = vmatprep.subr.bf16.mxu1 %v613_v3 }
  0x16   : > { %s460_s10 = sshll.u32 %s866_s30, 4  ;;  %s164_s30 = sand.u32 1, %s603_s13  }
  0x17   : > { %s711_s19 = scalar_lea.vmem %s855_s0, %s460_s10  ;;  %s442_s6 = sshll.u32 %s164_s30, 6 }
  0x18   : > { %v176_v10 = vld [vmem:[%s711_s19 + $0x8] sm:$0xff]  ;;  %470 = vmatpush1.bf16.msra.mxu0 %v469_v9  ;;  %500 = vmatpush1.bf16.msra.mxu1 %v469_v9  ;;  %v175_v30 = vld [vmem:[%s711_s19] sm:$0xff]  ;;  %v178_v32 = vld [vmem:[%s711_s19 + $0x18] sm:$0xff]  ;;  %s814_s16 = scalar_lea.sflag [#allocation3], %s164_s30 }
  0x19   : > { %v184_v11 = vld [vmem:[%s711_s19 + $0x48] sm:$0xff]  ;;  %447 = vmatprep.mubr.msk.f32.mxu0 %vm216_vm0, %v176_v10  ;;  %471 = vmatprep.subr.bf16.mxu0 %v613_v3  ;;  %v183_v31 = vld [vmem:[%s711_s19 + $0x40] sm:$0xff]  ;;  %v186_v33 = vld [vmem:[%s711_s19 + $0x58] sm:$0xff] }
  0x1a   : > { %451 = vmatprep.mubr.msk.f32.mxu1 %vm216_vm0, %v184_v11  ;;  %492 = vmatprep.subr.bf16.mxu1 %v613_v3  ;;  %v177_v34 = vld [vmem:[%s711_s19 + $0x10] sm:$0xff]  ;;  %v180_v36 = vld [vmem:[%s711_s19 + $0x28] sm:$0xff]  ;;  %v179_v38 = vld [vmem:[%s711_s19 + $0x20] sm:$0xff] }
  0x1b   : > { %v185_v35 = vld [vmem:[%s711_s19 + $0x50] sm:$0xff]  ;;  %v188_v37 = vld [vmem:[%s711_s19 + $0x68] sm:$0xff]  ;;  %v187_v39 = vld [vmem:[%s711_s19 + $0x60] sm:$0xff] }
  0x1c   : > { %473 = vmatpush1.bf16.msra.mxu0 %v472_v14  ;;  %501 = vmatpush1.bf16.msra.mxu1 %v472_v14  ;;  %v182_v40 = vld [vmem:[%s711_s19 + $0x38] sm:$0xff]  ;;  %v181_v42 = vld [vmem:[%s711_s19 + $0x30] sm:$0xff] }
  0x1d   : > { %474 = vmatprep.subr.bf16.mxu0 %v613_v3  ;;  %493 = vmatprep.subr.bf16.mxu1 %v613_v3  ;;  %v190_v41 = vld [vmem:[%s711_s19 + $0x78] sm:$0xff]  ;;  %v189_v43 = vld [vmem:[%s711_s19 + $0x70] sm:$0xff]  ;;  %s793_s19 = scalar_lea.vmem [#allocation2], %s442_s6 }
  0x1e   : > { %s376_s8 = sshll.u32 %s793_s19, 4  ;;  %s808_s8 = int_to_ptr.vmem [resolvable:$true] %s376_s8 }
  0x1f   : > { %s549_s17 = scalar_lea.vmem %s808_s8, 1024  ;;  %p556_p0 = scmp.lt.s32.totalorder %s808_s8, %s554_s24 }
  0x20   : > { %476 = vmatpush1.bf16.msra.mxu0 %v475_v17  ;;  %502 = vmatpush1.bf16.msra.mxu1 %v475_v17  ;;  %p550_p11 = scmp.ne.s32.totalorder %s808_s8, %s549_s17  ;;  %p557_p1 = scmp.lt.s32.totalorder %s555_s25, %s549_s17 }
  0x21   : > { %477 = vmatprep.subr.bf16.mxu0 %v613_v3  ;;  %494 = vmatprep.subr.bf16.mxu1 %v613_v3 }
  0x22   : > { %p551_p12 = pnand %p550_p11, %p675_p5  ;;  %p558_p2 = por %p557_p1, %p556_p0 }
  0x24   : > { %479 = vmatpush1.bf16.msra.mxu0 %v478_v20  ;;  %503 = vmatpush1.bf16.msra.mxu1 %v478_v20  ;;  %p552_p13 = pneg %p551_p12 }
  0x25   : > { %480 = vmatprep.subr.bf16.mxu0 %v613_v3  ;;  %495 = vmatprep.subr.bf16.mxu1 %v613_v3 }
  0x26   : > { %p559_p3 = pnand %p558_p2, %p552_p13 }
  0x28   : > { %482 = vmatpush1.bf16.msra.mxu0 %v481_v23  ;;  %504 = vmatpush1.bf16.msra.mxu1 %v481_v23 }
  0x29   : > { %483 = vmatprep.subr.bf16.mxu0 %v613_v3  ;;  %496 = vmatprep.subr.bf16.mxu1 %v613_v3 }
  0x2c   : > { %485 = vmatpush1.bf16.msra.mxu0 %v484_v26  ;;  %505 = vmatpush1.bf16.msra.mxu1 %v484_v26 }
  0x2d   : > { %486 = vmatprep.subr.bf16.mxu0 %v613_v3  ;;  %497 = vmatprep.subr.bf16.mxu1 %v613_v3 }
  0x30   : > { %488 = vmatpush1.bf16.msra.mxu0 %v487_v29  ;;  %506 = vmatpush1.bf16.msra.mxu1 %v487_v29 }
  0x33   : > { %306 = vmatmul.mubr.f32.vlgmr.msra.gmra.mrb[0].mxu0 %v175_v30  ;;  %326 = vmatmul.mubr.f32.vlgmr.msra.gmra.mrb[0].mxu1 %v183_v31 }
  0x34   : > { %448 = vmatprep.mubr.msk.f32.mxu0 %vm216_vm0, %v178_v32  ;;  %452 = vmatprep.mubr.msk.f32.mxu1 %vm216_vm0, %v186_v33 }
  0x37   : > { %311 = vmatmul.mubr.f32.gmra.mrb[2].mxu0 %v177_v34  ;;  %331 = vmatmul.mubr.f32.gmra.mrb[2].mxu1 %v185_v35 }
  0x38   : > { %449 = vmatprep.mubr.msk.f32.mxu0 %vm216_vm0, %v180_v36  ;;  %453 = vmatprep.mubr.msk.f32.mxu1 %vm216_vm0, %v188_v37 }
  0x3b   : > { %316 = vmatmul.mubr.f32.gmra.mrb[4].mxu0 %v179_v38  ;;  %336 = vmatmul.mubr.f32.gmra.mrb[4].mxu1 %v187_v39 }
  0x3c   : > { %450 = vmatprep.mubr.msk.f32.mxu0 %vm216_vm0, %v182_v40  ;;  %454 = vmatprep.mubr.msk.f32.mxu1 %vm216_vm0, %v190_v41 }
  0x3f   : > { %321 = vmatmul.mubr.f32.gmra.mrb[6].mxu0 %v181_v42  ;;  %341 = vmatmul.mubr.f32.gmra.mrb[6].mxu1 %v189_v43 }
 0x106   : > { %v307_v45 = vpop.f32.mrb[0].mxu0  ;;  %v327_v46 = vpop.f32.mrb[0].mxu1 }
 0x107   : > { %v308_v47 = vadd.f32 %v446_v44, %v307_v45  ;;  %v328_v48 = vadd.f32 %v446_v44, %v327_v46  ;;  %v309_v49 = vpop.f32.mrb[1].mxu0  ;;  %v329_v50 = vpop.f32.mrb[1].mxu1 }
 0x109   : > { %v346_v51 = vmax.f32 %v308_v47, 0.0  ;;  %v350_v52 = vmax.f32 %v328_v48, 0.0 }
 0x10a   : > { %v312_v53 = vpop.f32.mrb[2].mxu0  ;;  %v332_v54 = vpop.f32.mrb[2].mxu1 }
 0x10b   : > { %354 = vst [vmem:[%s793_s19] sm:$0xff] %v346_v51  ;;  %358 = vst [vmem:[%s793_s19 + $0x20] sm:$0xff] %v350_v52  ;;  %v313_v55 = vadd.f32 %v446_v44, %v312_v53  ;;  %v333_v56 = vadd.f32 %v446_v44, %v332_v54  ;;  %v314_v57 = vpop.f32.mrb[3].mxu0  ;;  %v334_v58 = vpop.f32.mrb[3].mxu1 }
 0x10d   : > { %v347_v59 = vmax.f32 %v313_v55, 0.0  ;;  %v351_v60 = vmax.f32 %v333_v56, 0.0 }
 0x10e   : > { %v317_v61 = vpop.f32.mrb[4].mxu0  ;;  %v337_v62 = vpop.f32.mrb[4].mxu1 }
 0x10f   : > { %355 = vst [vmem:[%s793_s19 + $0x8] sm:$0xff] %v347_v59  ;;  %359 = vst [vmem:[%s793_s19 + $0x28] sm:$0xff] %v351_v60  ;;  %v318_v63 = vadd.f32 %v446_v44, %v317_v61  ;;  %v338_v0 = vadd.f32 %v446_v44, %v337_v62  ;;  %v319_v1 = vpop.f32.mrb[5].mxu0  ;;  %v339_v2 = vpop.f32.mrb[5].mxu1 }
 0x111   : > { %v348_v3 = vmax.f32 %v318_v63, 0.0  ;;  %v352_v4 = vmax.f32 %v338_v0, 0.0 }
 0x112   : > { %v322_v5 = vpop.f32.mrb[6].mxu0  ;;  %v342_v6 = vpop.f32.mrb[6].mxu1 }
 0x113   : > { %356 = vst [vmem:[%s793_s19 + $0x10] sm:$0xff] %v348_v3  ;;  %360 = vst [vmem:[%s793_s19 + $0x30] sm:$0xff] %v352_v4  ;;  %v323_v7 = vadd.f32 %v446_v44, %v322_v5  ;;  %v343_v8 = vadd.f32 %v446_v44, %v342_v6  ;;  %v324_v9 = vpop.f32.mrb[7].mxu0  ;;  %v344_v10 = vpop.f32.mrb[7].mxu1 }
 0x115   : > { %v349_v11 = vmax.f32 %v323_v7, 0.0  ;;  %v353_v12 = vmax.f32 %v343_v8, 0.0 }
 0x117   : > { %357 = vst [vmem:[%s793_s19 + $0x18] sm:$0xff] %v349_v11  ;;  %361 = vst [vmem:[%s793_s19 + $0x38] sm:$0xff] %v353_v12 }
 0x118   : > { %562 = shalt.err (!%p559_p3)
}
 0x119   : > { %s563_s26 = scalar_lea.hbm %s806_s11, 1024  ;;  %s567_s29 = scalar_lea.hbm %s858_s3, 2048 }
 0x11a   : > { %p564_p4 = scmp.ne.s32.totalorder %s806_s11, %s563_s26  ;;  %p568_p9 = scmp.lt.u32.totalorder %s806_s11, %s858_s3 }
 0x11b   : > { %p569_p10 = scmp.lt.u32.totalorder %s567_s29, %s563_s26  ;;  %p571_p12 = scmp.lt.u32.totalorder %s563_s26, %s806_s11 }
 0x11c   : > { %p565_p7 = pnand %p564_p4, %p675_p5 }
 0x11d   : > { %p570_p11 = por %p569_p10, %p568_p9 }
 0x11e   : > { %p566_p8 = pneg %p565_p7 }
 0x11f   : > { %p572_p13 = por %p571_p12, %p570_p11 }
 0x121   : > { %p573_p0 = pnand %p572_p13, %p566_p8 }
 0x123   : > { %576 = shalt.err (!%p573_p0)
}
 0x124   : > { %s615_s5 = smov 128   ;;  %s616_s6 = smov 8  }
 0x125   : > { %507 = dma.vmem_to_hbm [thread:$0]  (%p675_p5), %s808_s8, 1024, %s806_s11, %s814_s16, %s615_s5, %s615_s5, %s616_s6  }
 0x126 PF: > { %p513_p1 = scmp.ge.s32.totalorder %s611_s15, 2  ;;  %s391_s19 = sand.u32 1, %s599_s12  }
 0x127   : > { %s392_s7 = scalar_lea.sflag [#allocation3], %s391_s19 }
 0x128   : > { %p510_p2 = pnand %p513_p1, %p679_p6 }
 0x12a   : > { %594 = dma.done.wait (!%p510_p2), %s392_s7, 1024  }
 0x12b   : > { %596 = vsyncadd (!%p510_p2), %s392_s7, 4294966272  ;;  %p13_p3 = scmp.ge.s32.totalorder %s662_s18, 4   ;;  %s861_s12 = smov %s603_s13 }
 0x12c   : > { %s862_s13 = smov %s607_s14  ;;  %s863_s14 = smov %s673_s21 }
 0x12d   : > { %s864_s15 = smov %s662_s18  ;;  %15 = sbr.rel (!%p13_p3) target bundleno = 3 (0x3), region = 67 }
 0x134   :  { %397 = vsyncpa [#allocation3], 1 }
 0x135   :  { %399 = vsyncpa [#allocation3 + $0x1], 1 }

</bundles_post_ra>
